<compile_context>
chip_gen: v6e
topology: v6e:2x2x1
jax: 0.10.0
libtpu: 0.0.40
codegen_flags: <defaults>
</compile_context>

<pallas_src>
import jax
import jax.numpy as jnp
from jax.experimental import pallas as pl
from jax.experimental.pallas import tpu as pltpu

_LANE = 128
# 4096 rows * 128 lanes * 4 B = 2 MiB per tile -> 8 MiB total with
# double-buffered in+out; safe on v5e's 16 MiB scoped-VMEM default.
_MAX_TILE_ROWS = 4096


def _renorm_kernel(a_ref, b_ref, x_ref, o_ref):
    # a_ref / b_ref: (C,) f32 in SMEM (scalar prefetch).
    # x_ref / o_ref: (tR, 128) f32 VMEM tiles (N, C block dims squeezed away).
    c = pl.program_id(1)
    o_ref[...] = x_ref[...] * a_ref[c] + b_ref[c]


def renorm(x,
           old_mean=(0.485, 0.456, 0.406),
           old_std=(0.229, 0.224, 0.225),
           scale=255.0,
           new_mean=(104.00698793, 116.66876762, 122.67891434),
           new_std=(1.0, 1.0, 1.0),
           flip_chs=True):
    """Pallas implementation of ReNorm.forward for NCHW float32 input."""
    N, C, H, W = x.shape
    assert C == 3, "ReNorm is defined for 3-channel inputs"

    old_mean = jnp.asarray(old_mean, jnp.float32)
    old_std = jnp.asarray(old_std, jnp.float32)
    new_mean = jnp.asarray(new_mean, jnp.float32)
    new_std = jnp.asarray(new_std, jnp.float32)

    flip = bool(flip_chs)
    perm = (jnp.arange(C - 1, -1, -1, dtype=jnp.int32) if flip
            else jnp.arange(C, dtype=jnp.int32))

    # Fold the whole pipeline into out[:, c] = x[:, perm[c]] * a[c] + b[c]
    #   a[c] = old_std[perm[c]] * scale / new_std[c]
    #   b[c] = (old_mean[perm[c]] * scale - new_mean[c]) / new_std[c]
    # (Not bit-exact vs. the step-by-step PyTorch sequence, but well within
    #  float32 tolerance.)
    a = (old_std[perm] * scale / new_std).astype(jnp.float32)
    b = ((old_mean[perm] * scale - new_mean) / new_std).astype(jnp.float32)

    # --- lane-dense spatial re-layout: (N, C, H, W) -> (N, C, R, 128) -------
    x = x.astype(jnp.float32)
    P = H * W
    P_pad = pl.cdiv(P, _LANE) * _LANE
    xf = x.reshape(N, C, P)
    if P_pad != P:
        xf = jnp.pad(xf, ((0, 0), (0, 0), (0, P_pad - P)))
    R = P_pad // _LANE
    xf = xf.reshape(N, C, R, _LANE)

    # Spatial tile rows: full plane if small, else a 2 MiB (multiple-of-8) tile.
    tR = R if R <= _MAX_TILE_ROWS else _MAX_TILE_ROWS
    n_tiles = pl.cdiv(R, tR)

    # Static channel flip folded into the input index_map.
    def in_idx(n, c, t, a_ref, b_ref):
        cc = (C - 1 - c) if flip else c
        return (n, cc, t, 0)

    def out_idx(n, c, t, a_ref, b_ref):
        return (n, c, t, 0)

    block = (pl.Squeezed(), pl.Squeezed(), tR, _LANE)

    grid_spec = pltpu.PrefetchScalarGridSpec(
        num_scalar_prefetch=2,
        grid=(N, C, n_tiles),
        in_specs=[pl.BlockSpec(block, in_idx)],
        out_specs=pl.BlockSpec(block, out_idx),
    )

    out = pl.pallas_call(
        _renorm_kernel,
        out_shape=jax.ShapeDtypeStruct((N, C, R, _LANE), jnp.float32),
        grid_spec=grid_spec,
        compiler_params=pltpu.CompilerParams(
            dimension_semantics=("parallel", "parallel", "parallel")),
    )(a, b, xf)

    out = out.reshape(N, C, P_pad)
    if P_pad != P:
        out = out[:, :, :P]
    return out.reshape(N, C, H, W)


def _renorm_ref(x, old_mean=(0.485, 0.456, 0.406), old_std=(0.229, 0.224, 0.225),
                scale=255.0, new_mean=(104.00698793, 116.66876762, 122.67891434),
                new_std=(1.0, 1.0, 1.0), flip_chs=True):
    """Pure-JAX reference mirroring the PyTorch forward step by step."""
    om = jnp.asarray(old_mean, jnp.float32).reshape(1, 3, 1, 1)
    os_ = jnp.asarray(old_std, jnp.float32).reshape(1, 3, 1, 1)
    nm = jnp.asarray(new_mean, jnp.float32).reshape(1, 3, 1, 1)
    ns = jnp.asarray(new_std, jnp.float32).reshape(1, 3, 1, 1)
    chs = jnp.arange(2, -1, -1) if flip_chs else jnp.arange(3)
    ts = x * os_ + om
    ts = scale * ts[:, chs]
    ts = (ts - nm) / ns
    return ts


if __name__ == "__main__":
    key = jax.random.PRNGKey(0)
    N, C, H, W = 2, 3, 16, 16   # ReNorm fixes C=3 (RGB); small spatial size
    x = jax.random.normal(key, (N, C, H, W), dtype=jnp.float32)

    out = renorm(x)
    out = jax.block_until_ready(out)

    ref = _renorm_ref(x)
    assert out.shape == (N, C, H, W)
    assert out.dtype == jnp.float32
    assert jnp.allclose(out, ref, atol=1e-4, rtol=1e-5), "mismatch vs reference"

    # Also check the non-flipped path (exercises the other static index_map).
    out_nf = jax.block_until_ready(renorm(x, flip_chs=False))
    ref_nf = _renorm_ref(x, flip_chs=False)
    assert jnp.allclose(out_nf, ref_nf, atol=1e-4, rtol=1e-5), "mismatch (no flip)"

    print("KERNEL_OK")
</pallas_src>

<mosaic_0001>
module attributes {stable_mosaic.version = 11 : i64} {
  func.func @_renorm_kernel(%arg0: i32, %arg1: i32, %arg2: i32, %arg3: memref<3xf32, #tpu.memory_space<smem>>, %arg4: memref<3xf32, #tpu.memory_space<smem>>, %arg5: memref<1x1x2x128xf32, #tpu.memory_space<vmem>>, %arg6: memref<1x1x2x128xf32, #tpu.memory_space<vmem>>) attributes {dimension_semantics = [#tpu.dimension_semantics<parallel>, #tpu.dimension_semantics<parallel>, #tpu.dimension_semantics<parallel>], iteration_bounds = array<i64: 2, 3, 1>, scalar_prefetch = 2 : i64, scratch_operands = 0 : i64, tpu.core_type = #tpu.core_type<tc>, window_params = [{transform_indices = @transform_0, window_bounds = array<i64: 1, 1, 2, 128>}, {transform_indices = @transform_1, window_bounds = array<i64: 1, 1, 2, 128>}]} {
    %c0 = arith.constant 0 : index
    %c0_0 = arith.constant 0 : index
    %c0_1 = arith.constant 0 : index
    %c0_2 = arith.constant 0 : index
    %0 = vector.load %arg5[%c0, %c0_0, %c0_1, %c0_2] : memref<1x1x2x128xf32, #tpu.memory_space<vmem>>, vector<1x1x2x128xf32>
    %1 = vector.shape_cast %0 : vector<1x1x2x128xf32> to vector<2x128xf32>
    %2 = arith.index_cast %arg1 : i32 to index
    %3 = memref.load %arg3[%2] : memref<3xf32, #tpu.memory_space<smem>>
    %4 = vector.broadcast %3 : f32 to vector<2x128xf32>
    %5 = arith.mulf %1, %4 : vector<2x128xf32>
    %6 = arith.index_cast %arg1 : i32 to index
    %7 = memref.load %arg4[%6] : memref<3xf32, #tpu.memory_space<smem>>
    %8 = vector.broadcast %7 : f32 to vector<2x128xf32>
    %9 = arith.addf %5, %8 : vector<2x128xf32>
    %c0_3 = arith.constant 0 : index
    %c0_4 = arith.constant 0 : index
    %c0_5 = arith.constant 0 : index
    %c0_6 = arith.constant 0 : index
    %10 = vector.load %arg6[%c0_3, %c0_4, %c0_5, %c0_6] : memref<1x1x2x128xf32, #tpu.memory_space<vmem>>, vector<1x1x2x128xf32>
    %11 = vector.shape_cast %10 : vector<1x1x2x128xf32> to vector<2x128xf32>
    %12 = vector.shape_cast %9 : vector<2x128xf32> to vector<1x1x2x128xf32>
    tpu.vector_store %arg6[%c0_3, %c0_4, %c0_5, %c0_6], %12 {strides = array<i32>} : memref<1x1x2x128xf32, #tpu.memory_space<vmem>>, vector<1x1x2x128xf32>,
    return
  }
  func.func @transform_0(%arg0: i32, %arg1: i32, %arg2: i32, %arg3: memref<3xf32, #tpu.memory_space<smem>>, %arg4: memref<3xf32, #tpu.memory_space<smem>>) -> (i32, i32, i32, i32) {
    %c2_i32 = arith.constant 2 : i32
    %0 = arith.subi %c2_i32, %arg1 : i32
    %c0_i32 = arith.constant 0 : i32
    %c0_i32_0 = arith.constant 0 : i32
    return %arg0, %0, %arg2, %c0_i32 : i32, i32, i32, i32
  }
  func.func @transform_1(%arg0: i32, %arg1: i32, %arg2: i32, %arg3: memref<3xf32, #tpu.memory_space<smem>>, %arg4: memref<3xf32, #tpu.memory_space<smem>>) -> (i32, i32, i32, i32) {
    %c0_i32 = arith.constant 0 : i32
    %c0_i32_0 = arith.constant 0 : i32
    return %arg0, %arg1, %arg2, %c0_i32 : i32, i32, i32, i32
  }
}

</mosaic_0001>

<bundles_post_ra>
// kernel: tpu_custom_call.1
= control target key start
LH: loop header
LB: loop body
LE: loop exit
PB: predicated region body
PF: predicated region fallthrough
CT: control target
= control target key end

     0   :  { %s582_s12 = smov [#allocation3]   ;;  %s807_s0 = inlined_call_operand.hbm [shape: f32[3], index: 0, kind: input, shape index: {}]   ;;  %s808_s2 = inlined_call_operand.hbm [shape: f32[2,3,2,128], index: 2, kind: input, shape index: {}]   ;;  %s809_s3 = inlined_call_operand.hbm [shape: f32[2,3,2,128], index: 3, kind: output, shape index: {}]   ;;  %s810_s1 = inlined_call_operand.vmem [shape: f32[3], index: 1, kind: input, shape index: {}]  }
   0x1   :  { %9 = dma.hbm_to_smem %s807_s0, 16, %s582_s12, [#allocation2] }
   0x2   :  { %s10_s17 = sshll.u32 %s810_s1, 4  ;;  %s11_s17 = int_to_ptr.vmem [resolvable:$true] %s10_s17 }
   0x3   :  { %s418_s18 = scalar_lea.vmem %s11_s17, 16  ;;  %p423_p1 = scmp.lt.s32.totalorder %s11_s17, %s11_s17 }
   0x4   :  { %p419_p0 = scmp.ne.s32.totalorder %s11_s17, %s418_s18  ;;  %p424_p2 = scmp.lt.s32.totalorder %s418_s18, %s418_s18 }
   0x6   :  { %p425_p3 = por %p424_p2, %p423_p1 }
   0x8   :  { %p426_p4 = pnand %p425_p3, %p419_p0 }
   0xa   :  { %429 = shalt.err (!%p426_p4)  }
   0xb   :  { %s583_s19 = smov [#allocation4]  }
   0xc   :  { %13 = dma.vmem_to_smem %s11_s17, 16, %s583_s19, [#allocation2] }
   0xd   :  { %528 = dma.done.wait [#allocation2], 32 }
   0xe   :  { %529 = vsyncadd [#allocation2], 4294967264 }
   0xf   :  { %15 = sfence }
  0x10   :  { %16 = vsyncpa [#allocation6], 0 }
  0x11   :  { %18 = vsyncpa [#allocation6 + $0x1], 0 }
  0x12   :  { %19 = vsyncpa [#allocation7], 0 }
  0x13   :  { %21 = vsyncpa [#allocation7 + $0x1], 0  ;;  %s612_s0 = smov 0   ;;  %s614_s1 = smov 0  }
  0x14   :  { %s616_s20 = smov 0   ;;  %s618_s21 = smov 0  }
  0x15   :  { %s620_s22 = smov 0   ;;  %s622_s23 = smov 0  }
  0x16   :  { %s624_s24 = smov 0   ;;  %s626_s25 = smov 0  }
  0x17   :  { %s628_s26 = smov 0   ;;  %s630_s27 = smov 0  }
  0x18   :  { %s632_s28 = smov 0  }
  0x19 LB: > { %814 = sst [smem:[#allocation12_spill]] %s576_s27  ;;  %s291_s29 = sadd.s32 4294967295, %s580_s28   ;;  %s580_s28 = sphi %s632_s28, %s27_s28   ;;  %s576_s27 = sphi %s630_s27, %s825_s27   ;;  %s572_s26 = sphi %s628_s26, %s833_s26   ;;  %s568_s25 = sphi %s626_s25, %s823_s25   ;;  %s564_s24 = sphi %s624_s24, %s832_s24   ;;  %s560_s23 = sphi %s622_s23, %s831_s23   ;;  %s556_s22 = sphi %s620_s22, %s830_s22   ;;  %s552_s21 = sphi %s618_s21, %s829_s21   ;;  %s548_s20 = sphi %s616_s20, %s828_s20   ;;  %s544_s1 = sphi %s614_s1, %s827_s1   ;;  %s540_s0 = sphi %s612_s0, %s826_s0  }
  0x1a   : > { %s292_s30 = sadd.s32 4294967294, %s580_s28   ;;  %s42_s4 = sadd.s32 1, %s572_s26 }
  0x1b   : > { %s46_s5 = sadd.s32 1, %s576_s27  ;;  %p44_p5 = scmp.ge.s32.totalorder %s42_s4, 3 }
  0x1c   : > { %s50_s6 = ssub.s32 2, %s572_s26  ;;  %s59_s7 = sadd.s32 1, %s560_s23 }
  0x1d   : > { %p66_p6 = scmp.ne.s32.totalorder %s560_s23, %s556_s22  ;;  %s835_s4 = smov (%p44_p5, %s42_s4), 0 }
  0x1e   : > { %815 = sst [smem:[#allocation13_spill]] %s835_s4  ;;  %s837_s5 = smov (!%p44_p5, %s46_s5), %s576_s27 }
  0x1f   : > { %s51_s8 = ssub.s32 2, %s835_s4  ;;  %p67_p7 = scmp.eq.s32.totalorder %s580_s28, 0 }
  0x20   : > { %p48_p8 = scmp.ge.s32.totalorder %s837_s5, 2  ;;  %s53_s9 = ssub.s32 %s50_s6, %s51_s8 }
  0x21   : > { %p682_p9 = por %p67_p7, %p66_p6  ;;  %p72_p10 = scmp.ne.s32.totalorder %s556_s22, %s552_s21 }
  0x22   : > { %s839_s5 = smov (%p48_p8, %s837_s5), 0  ;;  %p73_p11 = scmp.eq.s32.totalorder %s291_s29, 0 }
  0x23   : > { %817 = sst [smem:[#allocation14_spill]] %s839_s5  ;;  %s83_s11 = ssub.s32 %s572_s26, %s835_s4 }
  0x24   : > { %s52_s12 = ssub.s32 %s576_s27, %s839_s5  ;;  %s89_s13 = sadd.s32 1, %s548_s20 }
  0x25   : > { %s54_s14 = sor.u32 %s53_s9, %s52_s12  ;;  %p697_p12 = por %p73_p11, %p72_p10 }
  0x26   : > { %p57_p13 = scmp.eq.s32.totalorder %s54_s14, 0  ;;  %s84_s16 = sor.u32 %s83_s11, %s52_s12 }
  0x27   : > { %p87_p0 = scmp.eq.s32.totalorder %s84_s16, 0  ;;  %p99_p1 = scmp.ne.s32.totalorder %s548_s20, %s544_s1 }
  0x28   : > { %s704_s17 = scalar_select %p57_p13, %s560_s23, %s59_s7  }
  0x29   : > { %s707_s18 = scalar_select %p87_p0, %s548_s20, %s89_s13  }
  0x2a   : > { %p100_p2 = scmp.eq.s32.totalorder %s291_s29, 5  ;;  %p105_p3 = scmp.ne.s32.totalorder %s544_s1, %s540_s0 }
  0x2b   : > { %p106_p4 = scmp.eq.s32.totalorder %s292_s30, 5  ;;  %p318_p6 = scmp.lt.s32.totalorder %s580_s28, 6 }
  0x2c   : > { %p715_p5 = por %p100_p2, %p99_p1  ;;  %s126_s8 = sand.u32 1, %s560_s23  }
  0x2d   : > { %p720_p7 = por %p106_p4, %p105_p3  ;;  %s295_s7 = sshll.u32 %s126_s8, 1 }
  0x2e   : > { %s304_s9 = smul.u32 3, %s576_s27  ;;  %s130_s11 = scalar_lea.vmem [#allocation5], %s295_s7 }
  0x2f   : > { %s820_s21 = scalar_select %p720_p7, 1, 0 }
  0x30   : > { %s141_s12 = sshll.u32 %s130_s11, 4  ;;  %p728_p8 = pnand %p318_p6, %p682_p9  ;;  %s142_s12 = int_to_ptr.vmem [resolvable:$true] %s141_s12 }
  0x31   : > { %s137_s30 = sadd.s32 %s304_s9, %s50_s6  ;;  %p297_p10 = scmp.ge.s32.totalorder %s580_s28, 1 }
  0x32   : > { %s296_s13 = sshll.u32 %s137_s30, 5  ;;  %s127_s4 = scalar_lea.sflag [#allocation6], %s126_s8 }
  0x33   : > { %s139_s5 = scalar_lea.hbm %s808_s2, %s296_s13  ;;  %p432_p11 = pneg %p728_p8 }
  0x34   : > { %s443_s7 = scalar_lea.vmem %s142_s12, 32  ;;  %s584_s10 = smov [#allocation5]  }
  0x35   : > { %p444_p13 = scmp.ne.s32.totalorder %s142_s12, %s443_s7  ;;  %s448_s11 = sshll.u32 %s584_s10, 4  ;;  %s449_s11 = int_to_ptr.vmem [resolvable:$false] %s448_s11 }
  0x36   : > { %s450_s27 = scalar_lea.vmem %s449_s11, 64  ;;  %p451_p1 = scmp.lt.s32.totalorder %s142_s12, %s449_s11 }
  0x37   : > { %p446_p0 = pnand %p444_p13, %p432_p11  ;;  %p452_p2 = scmp.lt.s32.totalorder %s450_s27, %s443_s7 }
  0x39   : > { %p447_p9 = pneg %p446_p0  ;;  %p453_p3 = por %p452_p2, %p451_p1 }
  0x3b   : > { %p454_p4 = pnand %p453_p3, %p447_p9 }
  0x3d   : > { %457 = shalt.err (!%p454_p4)
}
  0x3e   : > { %313 = dma.hbm_to_vmem [thread:$0]  (!%p728_p8), %s139_s5, 32, %s142_s12, %s127_s4  }
  0x3f   : > { %p146_p6 = scmp.lt.s32.totalorder %s580_s28, 7 }
  0x41   : > { %p147_p7 = pnand %p297_p10, %p146_p6 }
  0x42   : > { %s152_s6 = sand.u32 (!%p147_p7), 1, %s556_s22  }
  0x43   : > { %150 = sbr.rel (%p147_p7) target bundleno = 100 (0x64), region = 24  ;;  %s298_s8 = sshll.u32 (!%p147_p7), %s152_s6, 1 }
  0x44   : > { %s153_s9 = scalar_lea.sflag (!%p147_p7), [#allocation6], %s152_s6  ;;  %s156_s30 = scalar_lea.vmem (!%p147_p7), [#allocation5], %s298_s8 }
  0x48   : > { %531 = dma.done.wait (%p697_p12), %s153_s9, 32  }
  0x49   : > { %533 = vsyncadd (%p697_p12), %s153_s9, 4294967264  ;;  %s172_s27 = sand.u32 1, %s544_s1   ;;  %s305_s4 = smul.u32 3, %s568_s25  ;;  %v176_v0 = vld [vmem:[%s156_s30] sm:$0x3] }
  0x4a   : > { %s177_s5 = sld [smem:[#allocation3 + %s564_s24]]  ;;  %s299_s12 = sshll.u32 %s172_s27, 1 }
  0x4b   : > { %s180_s29 = sld [smem:[#allocation4 + %s564_s24]]  ;;  %s197_s13 = sadd.s32 %s564_s24, %s305_s4 }
  0x4c   : > { %s174_s14 = scalar_lea.vmem [#allocation8], %s299_s12  ;;  %s301_s7 = sshll.u32 %s197_s13, 5 }
  0x4d   : > { %s201_s16 = sshll.u32 %s174_s14, 4  ;;  %s199_s11 = scalar_lea.hbm %s809_s3, %s301_s7  ;;  %s202_s16 = int_to_ptr.vmem [resolvable:$true] %s201_s16 }
  0x4e   : > { %s185_s25 = scalar_lea.sflag [#allocation7], %s172_s27  ;;  %s458_s6 = scalar_lea.vmem %s202_s16, 32 }
  0x4f   : > { %p459_p12 = scmp.ne.s32.totalorder %s202_s16, %s458_s6  ;;  %s585_s24 = smov [#allocation8]  }
  0x50   : > { %v178_v1 = vstv %s177_s5  ;;  %s462_s8 = sshll.u32 %s585_s24, 4  ;;  %s463_s8 = int_to_ptr.vmem [resolvable:$false] %s462_s8 }
  0x51   : > { %v179_v2 = vmul.f32 %v178_v1, %v176_v0  ;;  %v181_v3 = vstv %s180_s29  ;;  %p460_p7 = pnand %p459_p12, %p715_p5  ;;  %s464_s9 = scalar_lea.vmem %s463_s8, 64 }
  0x52   : > { %p465_p10 = scmp.lt.s32.totalorder %s202_s16, %s463_s8  ;;  %p466_p11 = scmp.lt.s32.totalorder %s464_s9, %s458_s6 }
  0x53   : > { %v182_v4 = vadd.f32 %v181_v3, %v179_v2  ;;  %p461_p8 = pneg %p460_p7 }
  0x54   : > { %p467_p13 = por %p466_p11, %p465_p10 }
  0x55   : > { %183 = vst [vmem:[%s174_s14] sm:$0x3] %v182_v4 }
  0x56   : > { %p468_p0 = pnand %p467_p13, %p461_p8 }
  0x58   : > { %471 = shalt.err (!%p468_p0)
}
  0x59   : > { %s472_s30 = scalar_lea.hbm %s199_s11, 32  ;;  %s476_s5 = scalar_lea.hbm %s809_s3, 192 }
  0x5a   : > { %p473_p9 = scmp.ne.s32.totalorder %s199_s11, %s472_s30  ;;  %p477_p3 = scmp.lt.s32.totalorder %s199_s11, %s809_s3 }
  0x5b   : > { %p478_p4 = scmp.lt.s32.totalorder %s476_s5, %s472_s30 }
  0x5c   : > { %p474_p1 = pnand %p473_p9, %p715_p5 }
  0x5d   : > { %p479_p6 = por %p478_p4, %p477_p3 }
  0x5e   : > { %p475_p2 = pneg %p474_p1 }
  0x60   : > { %p480_p12 = pnand %p479_p6, %p475_p2 }
  0x62   : > { %483 = shalt.err (!%p480_p12)
}
  0x63   : > { %308 = dma.vmem_to_hbm [thread:$0]  (%p715_p5), %s202_s16, 32, %s199_s11, %s185_s25  }
  0x64 PF: > { %p319_p7 = scmp.ge.s32.totalorder %s580_s28, 2  ;;  %s213_s13 = sand.u32 1, %s540_s0  }
  0x65   : > { %p822_p8 = scmp.ne.s32.totalorder %s820_s21, 0  ;;  %s214_s14 = scalar_lea.sflag [#allocation7], %s213_s13 }
  0x67   : > { %p315_p10 = pnand %p319_p7, %p822_p8 }
  0x69   : > { %p316_p11 = pneg %p315_p10 }
  0x6b   : > { %535 = dma.done.wait (%p316_p11), %s214_s14, 32  }
  0x6c   : > { %537 = vsyncadd (%p316_p11), %s214_s14, 4294967264  ;;  %s27_s28 = sadd.s32 1, %s580_s28   ;;  %s823_s25 = sld [smem:[#allocation12_spill]] }
  0x6d   : > { %p24_p13 = scmp.ge.s32.totalorder %s27_s28, 8   ;;  %s824_s19 = sld [smem:[#allocation13_spill]] }
  0x6e   : > { %s825_s27 = sld [smem:[#allocation14_spill]]  ;;  %s826_s0 = smov %s544_s1 }
  0x6f   : > { %s827_s1 = smov %s548_s20  ;;  %s828_s20 = smov %s707_s18 }
  0x70   : > { %s829_s21 = smov %s556_s22  ;;  %s830_s22 = smov %s560_s23 }
  0x71   : > { %s831_s23 = smov %s704_s17  ;;  %s832_s24 = smov %s572_s26 }
  0x72   :  { %26 = sbr.rel (!%p24_p13) target bundleno = 25 (0x19), region = 69 }
  0x73   : > { %s833_s26 = smov %s824_s19 }
  0x77   :  { %219 = vsyncpa [#allocation6], 1 }
  0x78   :  { %221 = vsyncpa [#allocation6 + $0x1], 1 }
  0x79   :  { %222 = vsyncpa [#allocation7], 1 }
  0x7a   :  { %224 = vsyncpa [#allocation7 + $0x1], 1 }

</bundles_post_ra>
